<compile_context>
chip_gen: v6e
topology: v6e:2x2x1
jax: 0.10.0
libtpu: 0.0.40
codegen_flags: <defaults>
</compile_context>

<pallas_src>
import functools

import jax
import jax.numpy as jnp
from jax.experimental import pallas as pl
from jax.experimental.pallas import tpu as pltpu


_VMEM_LIMIT_BYTES = 48 * 1024 * 1024      # safe on v5e/v6e (128 MiB) and v7x (64 MiB physical)
_XW_RESIDENT_BYTES = 16 * 1024 * 1024     # keep the per-layer XW slab VMEM-resident below this


def _round_up(x, m):
    return (x + m - 1) // m * m


def _largest_tile(n, cap, step=128):
    """Largest multiple of `step` that divides n and is <= cap (n is a multiple of step)."""
    c = (min(cap, n) // step) * step
    while c > step and n % c:
        c -= step
    return max(c, step)


# --------------------------------------------------------------------------
# Kernel 1: feature transform  XW = X @ W  (bf16 x bf16 -> f32 acc -> bf16),
# computed once per layer, hoisted out of the aggregation loop.
# --------------------------------------------------------------------------
def _xw_kernel(x_ref, w_ref, o_ref):
    o_ref[...] = jnp.dot(
        x_ref[...], w_ref[...], preferred_element_type=jnp.float32
    ).astype(o_ref.dtype)


def feature_transform(x_bf16, w_bf16, *, tm):
    n, fin = x_bf16.shape
    fp = w_bf16.shape[1]
    assert n % tm == 0
    return pl.pallas_call(
        _xw_kernel,
        out_shape=jax.ShapeDtypeStruct((n, fp), jnp.bfloat16),
        grid_spec=pltpu.PrefetchScalarGridSpec(
            num_scalar_prefetch=0,
            grid=(n // tm,),
            in_specs=[
                pl.BlockSpec((tm, fin), lambda i: (i, 0)),   # X row tile (bf16)
                pl.BlockSpec((fin, fp), lambda i: (0, 0)),   # full W, resident (bf16)
            ],
            out_specs=pl.BlockSpec((tm, fp), lambda i: (i, 0)),
        ),
        compiler_params=pltpu.CompilerParams(
            dimension_semantics=("parallel",),
            vmem_limit_bytes=_VMEM_LIMIT_BYTES,
        ),
    )(x_bf16, w_bf16)


# --------------------------------------------------------------------------
# Kernel 2: neighbor aggregation  out = act( A @ XW + b ).
# A streamed from HBM as int8 (exact 0/1), cast to bf16 in-kernel for the MXU.
# K-tiled over A's column axis with an f32 VMEM accumulator; XW VMEM-resident
# when it fits, otherwise streamed as (tk, Fp) slabs.
# --------------------------------------------------------------------------
def _agg_kernel(a_ref, xw_ref, b_ref, o_ref, acc_ref, *,
                tk, xw_resident, apply_relu, apply_log_softmax, valid_out):
    k = pl.program_id(1)

    @pl.when(k == 0)
    def _():
        acc_ref[...] = jnp.zeros_like(acc_ref)

    # int8 -> bf16 cast rides otherwise-idle VPU slots; MXU gets a bf16 x bf16 dot.
    a_tile = a_ref[...].astype(jnp.bfloat16)
    if xw_resident:
        xw = xw_ref[pl.ds(pl.multiple_of(k * tk, tk), tk), :]
    else:
        xw = xw_ref[...]
    acc_ref[...] += jnp.dot(a_tile, xw, preferred_element_type=jnp.float32)

    @pl.when(k == pl.num_programs(1) - 1)
    def _():
        h = acc_ref[...] + b_ref[...]
        if apply_relu:
            h = jnp.maximum(h, 0.0)
        if apply_log_softmax:
            # Mask padded lanes so they don't contribute to the normalization.
            lane = jax.lax.broadcasted_iota(jnp.int32, h.shape, 1)
            h = jnp.where(lane < valid_out, h, -1e30)
            m = jnp.max(h, axis=-1, keepdims=True)
            s = h - m
            h = s - jnp.log(jnp.sum(jnp.exp(s), axis=-1, keepdims=True))
        o_ref[...] = h.astype(o_ref.dtype)


def gcn_aggregate(a_i8, xw_bf16, b_pad, *, relu, log_softmax, valid_out, tm, tk):
    n = a_i8.shape[0]
    fp = xw_bf16.shape[1]
    assert n % tm == 0 and n % tk == 0

    xw_resident = xw_bf16.size * xw_bf16.dtype.itemsize <= _XW_RESIDENT_BYTES
    if xw_resident:
        xw_spec = pl.BlockSpec((n, fp), lambda i, k: (0, 0))   # one DMA, reused across grid
    else:
        xw_spec = pl.BlockSpec((tk, fp), lambda i, k: (k, 0))  # streamed K-slab

    kernel = functools.partial(
        _agg_kernel, tk=tk, xw_resident=xw_resident,
        apply_relu=relu, apply_log_softmax=log_softmax, valid_out=valid_out)

    out_dtype = jnp.float32 if log_softmax else jnp.bfloat16
    return pl.pallas_call(
        kernel,
        out_shape=jax.ShapeDtypeStruct((n, fp), out_dtype),
        grid_spec=pltpu.PrefetchScalarGridSpec(
            num_scalar_prefetch=0,
            grid=(n // tm, n // tk),
            in_specs=[
                pl.BlockSpec((tm, tk), lambda i, k: (i, k)),   # A tile (int8, dominant stream)
                xw_spec,                                       # XW (bf16)
                pl.BlockSpec((1, fp), lambda i, k: (0, 0)),    # bias (f32), resident
            ],
            out_specs=pl.BlockSpec((tm, fp), lambda i, k: (i, 0)),
            scratch_shapes=[pltpu.VMEM((tm, fp), jnp.float32)],
        ),
        compiler_params=pltpu.CompilerParams(
            dimension_semantics=("parallel", "arbitrary"),
            vmem_limit_bytes=_VMEM_LIMIT_BYTES,
        ),
    )(a_i8, xw_bf16, b_pad)


# --------------------------------------------------------------------------
# Parameter init + forward pass.
# --------------------------------------------------------------------------
def init_gcn_params(key, in_channels, hidden_channels, out_channels, num_layers):
    """Deterministic Glorot-uniform-ish init matching GCNConv param shapes."""
    dims = [in_channels] + [hidden_channels] * (num_layers - 1) + [out_channels]
    params = []
    for i in range(num_layers):
        key, kw = jax.random.split(key)
        fan_in, fan_out = dims[i], dims[i + 1]
        limit = jnp.sqrt(6.0 / (fan_in + fan_out))
        w = jax.random.uniform(kw, (fan_in, fan_out), jnp.float32, -limit, limit)
        b = jnp.zeros((1, fan_out), jnp.float32)
        params.append((w, b))
    return params


def gcn_forward(x, adj, params, out_channels):
    """GCN.forward: convs[:-1] with ReLU (+eval dropout=identity), last conv, log_softmax."""
    n = x.shape[0]
    np_ = _round_up(n, 128)
    tm = _largest_tile(np_, 512)       # aggregation row tile
    tk = _largest_tile(np_, 4096)      # contraction tile over A columns (2-4 MiB int8 A tiles)
    tm_xw = _largest_tile(np_, 2048)   # feature-transform row tile (decoupled from tm)

    pad_n = np_ - n
    # Zero padding is exact for A@XW and X@W (padded A rows/cols are zero).
    # A entries are 0/1 (normalize=False) -> int8 is exact; for weighted/normalized
    # adjacency this would have to stay bf16/f32.
    a_i8 = jnp.pad(adj, ((0, pad_n), (0, pad_n))).astype(jnp.int8)
    h = jnp.pad(x, ((0, pad_n), (0, 0))).astype(jnp.bfloat16)

    num_layers = len(params)
    for li, (w, b) in enumerate(params):
        is_last = li == num_layers - 1
        fout = w.shape[1]
        fp = _round_up(fout, 128)
        w_pad = jnp.pad(w, ((0, 0), (0, fp - fout)))
        b_pad = jnp.pad(b, ((0, 0), (0, fp - fout)))
        # Previous layer's output may carry zero-padded feature columns: pad W rows.
        fin_h = h.shape[1]
        if w_pad.shape[0] < fin_h:
            w_pad = jnp.pad(w_pad, ((0, fin_h - w_pad.shape[0]), (0, 0)))

        xw = feature_transform(h, w_pad.astype(jnp.bfloat16), tm=tm_xw)   # bf16 [Np, Fp]
        h = gcn_aggregate(
            a_i8, xw, b_pad,
            relu=not is_last, log_softmax=is_last, valid_out=fout,
            tm=tm, tk=tk,
        )
    return h[:n, :out_channels]


# --------------------------------------------------------------------------
# Pure-JAX references.
# --------------------------------------------------------------------------
def gcn_reference_f32(x, adj, params):
    """Full-f32 reference (for manual inspection; the bf16 fast path deviates
    from this by design, amplified by the unnormalized aggregation)."""
    h = x
    for w, b in params[:-1]:
        h = jnp.maximum(adj @ (h @ w) + b, 0.0)
    w, b = params[-1]
    return jax.nn.log_softmax(adj @ (h @ w) + b, axis=-1)


def gcn_reference_matched(x, adj, params):
    """Reference with the SAME precision policy as the Pallas kernels:
    bf16 matmul operands, f32 accumulation, bf16 hidden activations,
    f32 final layer + log_softmax."""
    a = adj.astype(jnp.bfloat16)          # 0/1 -> exact
    h = x.astype(jnp.bfloat16)
    n_layers = len(params)
    out = None
    for li, (w, b) in enumerate(params):
        xw = jnp.dot(h, w.astype(jnp.bfloat16),
                     preferred_element_type=jnp.float32).astype(jnp.bfloat16)
        hf = jnp.dot(a, xw, preferred_element_type=jnp.float32) + b
        if li < n_layers - 1:
            h = jnp.maximum(hf, 0.0).astype(jnp.bfloat16)
        else:
            out = jax.nn.log_softmax(hf, axis=-1)
    return out


if __name__ == "__main__":
    # small, deterministic shapes
    N = 128                # number of nodes
    in_channels = 32
    hidden_channels = 64
    out_channels = 16
    num_layers = 3

    key = jax.random.PRNGKey(0)
    kx, ka, kp = jax.random.split(key, 3)

    x = jax.random.normal(kx, (N, in_channels), jnp.float32)

    # deterministic sparse-ish symmetric adjacency (with self loops), stored dense
    # (NOTE: dense [N, N] adjacency is only viable for toy N; the real benchmark
    #  graph would need a sparse formulation.)
    r = jax.random.uniform(ka, (N, N), jnp.float32)
    adj = (r < 0.05).astype(jnp.float32)
    adj = jnp.maximum(adj, adj.T)
    adj = jnp.maximum(adj, jnp.eye(N, dtype=jnp.float32))

    params = init_gcn_params(kp, in_channels, hidden_channels, out_channels, num_layers)

    out = gcn_forward(x, adj, params, out_channels)
    jax.block_until_ready(out)

    assert out.shape == (N, out_channels)
    assert bool(jnp.all(jnp.isfinite(out)))
    # rows of log_softmax output must exp-sum to ~1
    assert jnp.allclose(jnp.sum(jnp.exp(out), axis=-1), 1.0, atol=1e-3)

    # Primary correctness check: pure-JAX reference with the same precision policy
    # (bf16 operands / f32 accumulation). This validates the kernel tiling, padding,
    # accumulation, masking and log_softmax logic independently of the deliberate
    # bf16 rounding of the fast path (which a full-f32 reference would conflate).
    ref_matched = gcn_reference_matched(x, adj, params)
    max_err = float(jnp.max(jnp.abs(out - ref_matched)))
    assert max_err < 1e-1, f"max abs err vs precision-matched reference: {max_err}"

    print("KERNEL_OK")
</pallas_src>

<mosaic_0001>
module attributes {stable_mosaic.version = 11 : i64} {
  func.func @_xw_kernel(%arg0: i32, %arg1: memref<128x32xbf16, #tpu.memory_space<vmem>>, %arg2: memref<32x128xbf16, #tpu.memory_space<vmem>>, %arg3: memref<128x128xbf16, #tpu.memory_space<vmem>>) attributes {dimension_semantics = [#tpu.dimension_semantics<parallel>], iteration_bounds = array<i64: 1>, scalar_prefetch = 0 : i64, scratch_operands = 0 : i64, tpu.core_type = #tpu.core_type<tc>, window_params = [{transform_indices = @transform_0, window_bounds = array<i64: 128, 32>}, {pipeline_mode = #tpu.pipeline_mode<synchronous>, transform_indices = @transform_1, window_bounds = array<i64: 32, 128>}, {transform_indices = @transform_2, window_bounds = array<i64: 128, 128>}]} {
    %c0 = arith.constant 0 : index
    %c0_0 = arith.constant 0 : index
    %0 = vector.load %arg1[%c0, %c0_0] : memref<128x32xbf16, #tpu.memory_space<vmem>>, vector<128x32xbf16>
    %c0_1 = arith.constant 0 : index
    %c0_2 = arith.constant 0 : index
    %1 = vector.load %arg2[%c0_1, %c0_2] : memref<32x128xbf16, #tpu.memory_space<vmem>>, vector<32x128xbf16>
    %cst = arith.constant dense<0.000000e+00> : vector<128x128xf32>
    %2 = tpu.matmul %0, %1, %cst {dimension_numbers = #tpu.dot_dimension_numbers<[1], [0], [0], [1], [0, 0, 1, 1], [], []>} : vector<128x32xbf16>, vector<32x128xbf16>, vector<128x128xf32> -> vector<128x128xf32>
    %3 = arith.truncf %2 : vector<128x128xf32> to vector<128x128xbf16>
    %c0_3 = arith.constant 0 : index
    %c0_4 = arith.constant 0 : index
    %4 = vector.load %arg3[%c0_3, %c0_4] : memref<128x128xbf16, #tpu.memory_space<vmem>>, vector<128x128xbf16>
    tpu.vector_store %arg3[%c0_3, %c0_4], %3 {strides = array<i32>} : memref<128x128xbf16, #tpu.memory_space<vmem>>, vector<128x128xbf16>,
    return
  }
  func.func @transform_0(%arg0: i32) -> (i32, i32) {
    %c0_i32 = arith.constant 0 : i32
    %c0_i32_0 = arith.constant 0 : i32
    return %arg0, %c0_i32 : i32, i32
  }
  func.func @transform_1(%arg0: i32) -> (i32, i32) {
    %c0_i32 = arith.constant 0 : i32
    %c0_i32_0 = arith.constant 0 : i32
    %c0_i32_1 = arith.constant 0 : i32
    return %c0_i32, %c0_i32_0 : i32, i32
  }
  func.func @transform_2(%arg0: i32) -> (i32, i32) {
    %c0_i32 = arith.constant 0 : i32
    %c0_i32_0 = arith.constant 0 : i32
    return %arg0, %c0_i32 : i32, i32
  }
}

</mosaic_0001>

<bundles_post_ra>
// kernel: tpu_custom_call.1
= control target key start
LH: loop header
LB: loop body
LE: loop exit
PB: predicated region body
PF: predicated region fallthrough
CT: control target
= control target key end

     0   :  { %vm85_vm0 = vcmask 261120   ;;  %s528_s0 = inlined_call_operand.vmem [shape: bf16[128,32], index: 0, kind: input, shape index: {}]   ;;  %s529_s1 = inlined_call_operand.vmem [shape: bf16[32,128], index: 1, kind: input, shape index: {}]   ;;  %s530_s2 = inlined_call_operand.hbm [shape: bf16[128,128], index: 2, kind: output, shape index: {}]  }
   0x1   :  { %v437_v0 = vld [vmem:[%s529_s1 + $0x8] sm:$0xff]   ;;  %v438_v1 = vld [vmem:[%s529_s1] sm:$0xff]   ;;  %v443_v6 = vld [vmem:[%s528_s0 + $0x10] sm:$0xff]  }
   0x2   :  { %410 = vmatprep.subr.bf16.mxu0 %v437_v0  ;;  %430 = vmatprep.subr.bf16.mxu1 %v437_v0  ;;  %v439_v2 = vld [vmem:[%s528_s0] sm:$0xff]   ;;  %v441_v4 = vld [vmem:[%s528_s0 + $0x8] sm:$0xff]   ;;  %v444_v7 = vld [vmem:[%s528_s0 + $0x30] sm:$0xff]  }
   0x3   :  { %411 = vmatpush3.bf16.msra.mxu0 %v437_v0  ;;  %432 = vmatpush3.bf16.msra.mxu1 %v437_v0  ;;  %v440_v3 = vld [vmem:[%s528_s0 + $0x20] sm:$0xff]   ;;  %v442_v5 = vld [vmem:[%s528_s0 + $0x28] sm:$0xff]  }
   0x4   :  { %412 = vmatprep.subr.bf16.mxu0 %v438_v1  ;;  %431 = vmatprep.subr.bf16.mxu1 %v438_v1 }
   0x5   :  { %414 = vmatprep.mubr.msk.bf16.mxu0 %vm85_vm0, %v439_v2  ;;  %422 = vmatprep.mubr.msk.bf16.mxu1 %vm85_vm0, %v440_v3 }
   0x7   :  { %413 = vmatpush3.bf16.msra.mxu0 %v438_v1  ;;  %433 = vmatpush3.bf16.msra.mxu1 %v438_v1 }
   0xa   :  { %415 = vmatmul.mubr.msk.bf16.vlgmr.msra.gmra.mxu0 %vm85_vm0, %v441_v4  ;;  %423 = vmatmul.mubr.msk.bf16.vlgmr.msra.gmra.mxu1 %vm85_vm0, %v442_v5 }
   0xb   :  { %7 = vsyncpa [#allocation3], 0  ;;  %418 = vmatprep.mubr.msk.bf16.mxu0 %vm85_vm0, %v443_v6  ;;  %426 = vmatprep.mubr.msk.bf16.mxu1 %vm85_vm0, %v444_v7  ;;  %v445_v8 = vld [vmem:[%s528_s0 + $0x18] sm:$0xff]  }
   0xc   :  { %v446_v9 = vld [vmem:[%s528_s0 + $0x38] sm:$0xff]   ;;  %s469_s0 = smov [#allocation2]  }
   0xd   :  { %s292_s28 = sshll.u32 %s469_s0, 4  ;;  %s293_s28 = int_to_ptr.vmem [resolvable:$true] %s292_s28 }
   0xe   :  { %s447_s29 = scalar_lea.vmem %s293_s28, 1024  ;;  %p452_p1 = scmp.lt.s32.totalorder %s293_s28, %s293_s28 }
   0xf   :  { %p448_p0 = scmp.ne.s32.totalorder %s293_s28, %s447_s29  ;;  %p453_p2 = scmp.lt.s32.totalorder %s447_s29, %s447_s29 }
  0x11   :  { %p454_p3 = por %p453_p2, %p452_p1 }
  0x12   :  { %419 = vmatmul.mubr.msk.bf16.gmra.mxu0 %vm85_vm0, %v445_v8  ;;  %427 = vmatmul.mubr.msk.bf16.gmra.mxu1 %vm85_vm0, %v446_v9 }
  0x13   :  { %p455_p4 = pnand %p454_p3, %p448_p0 }
  0xca   :  { %v416_v10 = vpop.f32.mrf.mxu0  ;;  %v424_v11 = vpop.f32.mrf.mxu1 }
  0xcc   :  { %v144_v12 = vpop.f32.mrf.mxu0  ;;  %v176_v13 = vpop.f32.mrf.mxu1 }
  0xce   :  { %v417_v14 = vpop.f32.mrf.mxu0  ;;  %v425_v15 = vpop.f32.mrf.mxu1 }
  0xcf   :  { %v361_v16 = vpack.c.bf16 %v417_v14, %v416_v10  ;;  %v381_v17 = vpack.c.bf16 %v425_v15, %v424_v11 }
  0xd0   :  { %v147_v18 = vpop.f32.mrf.mxu0  ;;  %v179_v19 = vpop.f32.mrf.mxu1 }
  0xd1   :  { %393 = vst [vmem:[#allocation2 + $0x8] sm:$0xff] %v361_v16   ;;  %397 = vst [vmem:[#allocation2 + $0x28] sm:$0xff] %v381_v17   ;;  %v356_v20 = vpack.c.bf16 %v147_v18, %v144_v12  ;;  %v376_v21 = vpack.c.bf16 %v179_v19, %v176_v13 }
  0xd2   :  { %v420_v22 = vpop.f32.mrf.mxu0  ;;  %v428_v23 = vpop.f32.mrf.mxu1 }
  0xd3   :  { %357 = vst [vmem:[#allocation2] sm:$0xff] %v356_v20   ;;  %396 = vst [vmem:[#allocation2 + $0x20] sm:$0xff] %v376_v21  }
  0xd4   :  { %v160_v24 = vpop.f32.mrf.mxu0  ;;  %v192_v25 = vpop.f32.mrf.mxu1 }
  0xd6   :  { %v421_v26 = vpop.f32.mrf.mxu0  ;;  %v429_v27 = vpop.f32.mrf.mxu1 }
  0xd7   :  { %v371_v28 = vpack.c.bf16 %v421_v26, %v420_v22  ;;  %v391_v29 = vpack.c.bf16 %v429_v27, %v428_v23 }
  0xd8   :  { %v163_v30 = vpop.f32.mrf.mxu0  ;;  %v195_v31 = vpop.f32.mrf.mxu1 }
  0xd9   :  { %395 = vst [vmem:[#allocation2 + $0x18] sm:$0xff] %v371_v28   ;;  %399 = vst [vmem:[#allocation2 + $0x38] sm:$0xff] %v391_v29   ;;  %v366_v32 = vpack.c.bf16 %v163_v30, %v160_v24  ;;  %v386_v33 = vpack.c.bf16 %v195_v31, %v192_v25 }
  0xdb   :  { %394 = vst [vmem:[#allocation2 + $0x10] sm:$0xff] %v366_v32   ;;  %398 = vst [vmem:[#allocation2 + $0x30] sm:$0xff] %v386_v33  }
  0xdc   :  { %458 = shalt.err (!%p455_p4)
}
  0xdd   :  { %s470_s30 = smov 64   ;;  %s471_s3 = smov 4  }
  0xde   :  { %298 = dma.vmem_to_hbm [thread:$0]  %s293_s28, 1024, %s530_s2, [#allocation3], %s470_s30, %s470_s30, %s471_s3  }
  0xdf   :  { %467 = dma.done.wait [#allocation3], 1024  }
  0xe0   :  { %468 = vsyncadd [#allocation3], 4294966272 }
  0xe1   :  { %302 = vsyncpa [#allocation3], 1 }

</bundles_post_ra>
